<compile_context>
chip_gen: v6e
topology: v6e:2x2x1
jax: 0.10.0
libtpu: 0.0.40
codegen_flags: <defaults>
</compile_context>

<pallas_src>
import functools
import math

import jax
import jax.numpy as jnp
from jax import lax
from jax.experimental import pallas as pl
from jax.experimental.pallas import tpu as pltpu


_NEG_INF = -1e30  # large finite negative: no exp(-inf - -inf) NaNs on masked rows


def _layernorm_f32(x, gamma, beta, eps=1e-5):
    x = x.astype(jnp.float32)
    mean = jnp.mean(x, axis=-1, keepdims=True)
    var = jnp.mean((x - mean) ** 2, axis=-1, keepdims=True)
    return ((x - mean) * lax.rsqrt(var + eps) * gamma.astype(jnp.float32)
            + beta.astype(jnp.float32))


def transformer_block_kernel(
    x_ref,
    ln1_g_ref, ln1_b_ref,
    wqkv_ref, bqkv_ref,
    wout_ref, bout_ref,
    ln2_g_ref, ln2_b_ref,
    w1_ref, b1_ref,
    w2_ref, b2_ref,
    o_ref,
    kv_scratch,
    *, num_heads: int, q_tile: int, kv_tile: int,
):
    qi = pl.program_id(1)
    TQ, TK = q_tile, kv_tile
    C = x_ref.shape[-1]
    H = num_heads
    D = C // H
    dd = x_ref.dtype                        # MXU operand dtype (bf16 recommended)
    scale = 1.0 / math.sqrt(D)

    x_q = x_ref[0].astype(jnp.float32)      # (TQ, C) residual input, f32

    # ---------------- LN1 + fused QKV projection for this tile ----------------
    # The rows of this query tile are exactly the newly-visible KV rows under the
    # causal mask, so one projection serves both Q and the K/V cache update.
    h1 = _layernorm_f32(x_q, ln1_g_ref[...], ln1_b_ref[...])
    qkv = jnp.dot(h1.astype(dd), wqkv_ref[...], preferred_element_type=jnp.float32)
    qkv = qkv + bqkv_ref[...].astype(jnp.float32)                 # (TQ, 3C) f32

    q = qkv[:, 0:C] * scale
    # head-major (H, TQ, D): static lane slices + major-axis stack (no lane concat)
    q3 = jnp.stack([q[:, h * D:(h + 1) * D] for h in range(H)], axis=0).astype(dd)

    # cache K,V rows for this tile; scratch persists across the sequential qi axis
    kv_start = pl.multiple_of(qi * TQ, TQ)
    kv_scratch[pl.ds(kv_start, TQ), :] = qkv[:, C:3 * C].astype(dd)

    # hoisted causal-mask iotas: mask(j) = (q_pos - k_pos_local) >= j*TK
    row_minus_col = (qi * TQ + lax.broadcasted_iota(jnp.int32, (TQ, TK), 0)
                     - lax.broadcasted_iota(jnp.int32, (TQ, TK), 1))

    # ---------------- flash / online-softmax loop over cached KV tiles ----------------
    def kv_step(j, carry):
        m, l, acc = carry                                          # f32 carries
        start = pl.multiple_of(j * TK, TK)
        kv = kv_scratch[pl.ds(start, TK), :]                       # (TK, 2C) dd
        k3 = jnp.stack([kv[:, h * D:(h + 1) * D] for h in range(H)], axis=0)
        v3 = jnp.stack([kv[:, C + h * D:C + (h + 1) * D] for h in range(H)], axis=0)

        s = jnp.einsum("htd,hsd->hts", q3, k3,
                       preferred_element_type=jnp.float32)         # (H, TQ, TK)
        s = jnp.where((row_minus_col >= j * TK)[None, :, :], s, _NEG_INF)

        m_new = jnp.maximum(m, jnp.max(s, axis=-1, keepdims=True))
        alpha = jnp.exp(m - m_new)
        p = jnp.exp(s - m_new)
        l_new = alpha * l + jnp.sum(p, axis=-1, keepdims=True)
        acc_new = alpha * acc + jnp.einsum("hts,hsd->htd", p.astype(dd), v3,
                                           preferred_element_type=jnp.float32)
        return m_new, l_new, acc_new

    n_kv = (qi + 1) * (TQ // TK)            # causal: skip KV tiles above the diagonal
    m0 = jnp.full((H, TQ, 1), _NEG_INF, jnp.float32)
    l0 = jnp.zeros((H, TQ, 1), jnp.float32)
    a0 = jnp.zeros((H, TQ, D), jnp.float32)
    m, l, acc = lax.fori_loop(0, n_kv, kv_step, (m0, l0, a0))

    attn = acc * pl.reciprocal(l, approx=True)                     # (H, TQ, D) f32

    # out-projection: per-head accumulation into a lane-dense (TQ, C) f32 slab
    proj = jnp.zeros((TQ, C), jnp.float32) + bout_ref[...].astype(jnp.float32)
    for h in range(H):
        proj = proj + jnp.dot(attn[h].astype(dd), wout_ref[h * D:(h + 1) * D, :],
                              preferred_element_type=jnp.float32)
    x1 = x_q + proj                                                # residual 1

    # ---------------- MLP branch ----------------
    h2 = _layernorm_f32(x1, ln2_g_ref[...], ln2_b_ref[...])
    f = jnp.dot(h2.astype(dd), w1_ref[...], preferred_element_type=jnp.float32)
    f = f + b1_ref[...].astype(jnp.float32)
    f = 0.5 * f * (1.0 + lax.erf(f * (1.0 / math.sqrt(2.0))))      # exact GELU
    y = jnp.dot(f.astype(dd), w2_ref[...], preferred_element_type=jnp.float32)
    y = y + b2_ref[...].astype(jnp.float32)

    o_ref[0] = (x1 + y).astype(o_ref.dtype)


def _largest_tile(n, cap):
    t = min(n, cap)
    while n % t:
        t -= 1
    return t


def transformer_block(x, params, num_heads, *, q_tile=None, kv_tile=None):
    B, T, C = x.shape
    F = params["w1"].shape[1]
    assert C % num_heads == 0

    # MXU operand dtype follows x.dtype (pass bf16 x for bf16 weights/matmuls).
    params = {k: v.astype(x.dtype) for k, v in params.items()}

    tq = q_tile if q_tile is not None else _largest_tile(T, 256)
    tk = kv_tile if kv_tile is not None else tq
    assert T % tq == 0 and tq % tk == 0
    nq = T // tq

    def wspec(shape):
        return pl.BlockSpec(shape, lambda b, qi: (0, 0))

    in_specs = [
        pl.BlockSpec((1, tq, C), lambda b, qi: (b, qi, 0)),   # x: query-row slab
        wspec((1, C)), wspec((1, C)),                         # ln1 gamma/beta
        wspec((C, 3 * C)), wspec((1, 3 * C)),                 # qkv proj (in,out) + bias
        wspec((C, C)), wspec((1, C)),                         # out proj + bias
        wspec((1, C)), wspec((1, C)),                         # ln2 gamma/beta
        wspec((C, F)), wspec((1, F)),                         # ff linear 1 + bias
        wspec((F, C)), wspec((1, C)),                         # ff linear 2 + bias
    ]
    out_specs = pl.BlockSpec((1, tq, C), lambda b, qi: (b, qi, 0))

    itemsize = jnp.dtype(x.dtype).itemsize
    weight_bytes = sum(int(v.size) * v.dtype.itemsize for v in params.values())
    scratch_bytes = T * 2 * C * itemsize                     # packed K/V cache
    act_bytes = 2 * (2 * tq * C) * itemsize                  # double-buffered in/out slabs
    vmem_limit = int(min(64 * 1024 * 1024,
                         max(32 * 1024 * 1024,
                             2 * weight_bytes + scratch_bytes + act_bytes + (8 << 20))))

    kernel = functools.partial(transformer_block_kernel,
                               num_heads=num_heads, q_tile=tq, kv_tile=tk)
    return pl.pallas_call(
        kernel,
        out_shape=jax.ShapeDtypeStruct((B, T, C), x.dtype),
        grid_spec=pltpu.PrefetchScalarGridSpec(
            num_scalar_prefetch=0,
            grid=(B, nq),
            in_specs=in_specs,
            out_specs=out_specs,
            scratch_shapes=[pltpu.VMEM((T, 2 * C), x.dtype)],  # per-core K/V cache
        ),
        compiler_params=pltpu.CompilerParams(
            # qi carries a dependency through the K/V scratch -> "arbitrary";
            # b is independent -> "parallel" (megacore split on v7x).
            dimension_semantics=("parallel", "arbitrary"),
            vmem_limit_bytes=vmem_limit,
        ),
    )(
        x,
        params["ln1_g"], params["ln1_b"],
        params["wqkv"], params["bqkv"],
        params["wout"], params["bout"],
        params["ln2_g"], params["ln2_b"],
        params["w1"], params["b1"],
        params["w2"], params["b2"],
    )


# ------------------- pure-JAX reference (for correctness check) -------------------
def reference_block(x, params, num_heads):
    B, T, C = x.shape
    D = C // num_heads

    def ln(z, g, b):
        m = jnp.mean(z, axis=-1, keepdims=True)
        v = jnp.mean((z - m) ** 2, axis=-1, keepdims=True)
        return (z - m) / jnp.sqrt(v + 1e-5) * g + b

    h = ln(x, params["ln1_g"][0], params["ln1_b"][0])
    qkv = h @ params["wqkv"] + params["bqkv"][0]
    qkv = qkv.reshape(B, T, 3, num_heads, D).transpose(2, 0, 3, 1, 4)
    q, k, v = qkv[0], qkv[1], qkv[2]
    att = jnp.einsum("bhtd,bhsd->bhts", q, k) / math.sqrt(D)
    mask = jnp.tril(jnp.ones((T, T), dtype=bool))
    att = jnp.where(mask, att, -jnp.inf)
    att = jax.nn.softmax(att, axis=-1)
    out = jnp.einsum("bhts,bhsd->bhtd", att, v)
    out = out.transpose(0, 2, 1, 3).reshape(B, T, C)
    x = x + out @ params["wout"] + params["bout"][0]

    h2 = ln(x, params["ln2_g"][0], params["ln2_b"][0])
    f = h2 @ params["w1"] + params["b1"][0]
    f = 0.5 * f * (1.0 + jax.lax.erf(f / math.sqrt(2.0)))
    x = x + f @ params["w2"] + params["b2"][0]
    return x


if __name__ == "__main__":
    B, T = 2, 8
    embed_dim, num_heads, ff_dim = 32, 4, 64

    key = jax.random.PRNGKey(0)
    keys = jax.random.split(key, 8)
    x = jax.random.normal(keys[0], (B, T, embed_dim), dtype=jnp.float32)

    scale = 0.02
    params = {
        # nn.Linear weights stored pre-transposed to (in, out) for direct x @ W
        "wqkv": scale * jax.random.normal(keys[1], (embed_dim, 3 * embed_dim), jnp.float32),
        "bqkv": scale * jax.random.normal(keys[2], (1, 3 * embed_dim), jnp.float32),
        "wout": scale * jax.random.normal(keys[3], (embed_dim, embed_dim), jnp.float32),
        "bout": scale * jax.random.normal(keys[4], (1, embed_dim), jnp.float32),
        "w1":   scale * jax.random.normal(keys[5], (embed_dim, ff_dim), jnp.float32),
        "b1":   scale * jax.random.normal(keys[6], (1, ff_dim), jnp.float32),
        "w2":   scale * jax.random.normal(keys[7], (ff_dim, embed_dim), jnp.float32),
        "b2":   jnp.zeros((1, embed_dim), jnp.float32),
        "ln1_g": jnp.ones((1, embed_dim), jnp.float32),
        "ln1_b": jnp.zeros((1, embed_dim), jnp.float32),
        "ln2_g": jnp.ones((1, embed_dim), jnp.float32),
        "ln2_b": jnp.zeros((1, embed_dim), jnp.float32),
    }

    ref = reference_block(x, params, num_heads)

    # f32 path: tight check vs pure-JAX reference
    out = jax.block_until_ready(transformer_block(x, params, num_heads))
    assert out.shape == (B, T, embed_dim)
    assert jnp.allclose(out, ref, rtol=3e-3, atol=3e-3), "f32 mismatch vs reference"

    # bf16 MXU-operand path (f32 accumulation / LN / softmax in-kernel): loose check
    out_bf16 = jax.block_until_ready(
        transformer_block(x.astype(jnp.bfloat16), params, num_heads))
    assert jnp.allclose(out_bf16.astype(jnp.float32), ref, rtol=1e-1, atol=1e-1), \
        "bf16 mismatch vs reference"

    print("KERNEL_OK")
</pallas_src>

<mosaic_0001>
module attributes {stable_mosaic.version = 11 : i64} {
  func.func @transformer_block_kernel(%arg0: i32, %arg1: i32, %arg2: memref<1x8x32xf32, #tpu.memory_space<vmem>>, %arg3: memref<1x32xf32, #tpu.memory_space<vmem>>, %arg4: memref<1x32xf32, #tpu.memory_space<vmem>>, %arg5: memref<32x96xf32, #tpu.memory_space<vmem>>, %arg6: memref<1x96xf32, #tpu.memory_space<vmem>>, %arg7: memref<32x32xf32, #tpu.memory_space<vmem>>, %arg8: memref<1x32xf32, #tpu.memory_space<vmem>>, %arg9: memref<1x32xf32, #tpu.memory_space<vmem>>, %arg10: memref<1x32xf32, #tpu.memory_space<vmem>>, %arg11: memref<32x64xf32, #tpu.memory_space<vmem>>, %arg12: memref<1x64xf32, #tpu.memory_space<vmem>>, %arg13: memref<64x32xf32, #tpu.memory_space<vmem>>, %arg14: memref<1x32xf32, #tpu.memory_space<vmem>>, %arg15: memref<1x8x32xf32, #tpu.memory_space<vmem>>, %arg16: memref<8x64xf32, #tpu.memory_space<vmem>>) attributes {dimension_semantics = [#tpu.dimension_semantics<parallel>, #tpu.dimension_semantics<arbitrary>], iteration_bounds = array<i64: 2, 1>, scalar_prefetch = 0 : i64, scratch_operands = 1 : i64, tpu.core_type = #tpu.core_type<tc>, window_params = [{transform_indices = @transform_0, window_bounds = array<i64: 1, 8, 32>}, {pipeline_mode = #tpu.pipeline_mode<synchronous>, transform_indices = @transform_1, window_bounds = array<i64: 1, 32>}, {pipeline_mode = #tpu.pipeline_mode<synchronous>, transform_indices = @transform_2, window_bounds = array<i64: 1, 32>}, {pipeline_mode = #tpu.pipeline_mode<synchronous>, transform_indices = @transform_3, window_bounds = array<i64: 32, 96>}, {pipeline_mode = #tpu.pipeline_mode<synchronous>, transform_indices = @transform_4, window_bounds = array<i64: 1, 96>}, {pipeline_mode = #tpu.pipeline_mode<synchronous>, transform_indices = @transform_5, window_bounds = array<i64: 32, 32>}, {pipeline_mode = #tpu.pipeline_mode<synchronous>, transform_indices = @transform_6, window_bounds = array<i64: 1, 32>}, {pipeline_mode = #tpu.pipeline_mode<synchronous>, transform_indices = @transform_7, window_bounds = array<i64: 1, 32>}, {pipeline_mode = #tpu.pipeline_mode<synchronous>, transform_indices = @transform_8, window_bounds = array<i64: 1, 32>}, {pipeline_mode = #tpu.pipeline_mode<synchronous>, transform_indices = @transform_9, window_bounds = array<i64: 32, 64>}, {pipeline_mode = #tpu.pipeline_mode<synchronous>, transform_indices = @transform_10, window_bounds = array<i64: 1, 64>}, {pipeline_mode = #tpu.pipeline_mode<synchronous>, transform_indices = @transform_11, window_bounds = array<i64: 64, 32>}, {pipeline_mode = #tpu.pipeline_mode<synchronous>, transform_indices = @transform_12, window_bounds = array<i64: 1, 32>}, {transform_indices = @transform_13, window_bounds = array<i64: 1, 8, 32>}]} {
    %c0 = arith.constant 0 : index
    %c0_0 = arith.constant 0 : index
    %c0_1 = arith.constant 0 : index
    %0 = vector.load %arg2[%c0, %c0_0, %c0_1] : memref<1x8x32xf32, #tpu.memory_space<vmem>>, vector<1x8x32xf32>
    %1 = vector.shape_cast %0 : vector<1x8x32xf32> to vector<8x32xf32>
    %c0_2 = arith.constant 0 : index
    %c0_3 = arith.constant 0 : index
    %2 = vector.load %arg3[%c0_2, %c0_3] : memref<1x32xf32, #tpu.memory_space<vmem>>, vector<1x32xf32>
    %c0_4 = arith.constant 0 : index
    %c0_5 = arith.constant 0 : index
    %3 = vector.load %arg4[%c0_4, %c0_5] : memref<1x32xf32, #tpu.memory_space<vmem>>, vector<1x32xf32>
    %cst = arith.constant dense<0.000000e+00> : vector<8xf32>
    %4 = vector.multi_reduction <add>, %1, %cst [1] : vector<8x32xf32> to vector<8xf32>
    %5 = vector.shape_cast %4 : vector<8xf32> to vector<8x1xf32>
    %cst_6 = arith.constant 3.200000e+01 : f32
    %6 = vector.broadcast %cst_6 : f32 to vector<8x1xf32>
    %7 = arith.divf %5, %6 : vector<8x1xf32>
    %8 = vector.broadcast %7 : vector<8x1xf32> to vector<8x32xf32>
    %9 = arith.subf %1, %8 : vector<8x32xf32>
    %10 = arith.mulf %9, %9 : vector<8x32xf32>
    %cst_7 = arith.constant dense<0.000000e+00> : vector<8xf32>
    %11 = vector.multi_reduction <add>, %10, %cst_7 [1] : vector<8x32xf32> to vector<8xf32>
    %12 = vector.shape_cast %11 : vector<8xf32> to vector<8x1xf32>
    %cst_8 = arith.constant 3.200000e+01 : f32
    %13 = vector.broadcast %cst_8 : f32 to vector<8x1xf32>
    %14 = arith.divf %12, %13 : vector<8x1xf32>
    %15 = vector.broadcast %7 : vector<8x1xf32> to vector<8x32xf32>
    %16 = arith.subf %1, %15 : vector<8x32xf32>
    %cst_9 = arith.constant 9.99999974E-6 : f32
    %17 = vector.broadcast %cst_9 : f32 to vector<8x1xf32>
    %18 = arith.addf %14, %17 : vector<8x1xf32>
    %19 = math.rsqrt %18 : vector<8x1xf32>
    %20 = vector.broadcast %19 : vector<8x1xf32> to vector<8x32xf32>
    %21 = arith.mulf %16, %20 : vector<8x32xf32>
    %22 = vector.broadcast %2 : vector<1x32xf32> to vector<8x32xf32>
    %23 = arith.mulf %21, %22 : vector<8x32xf32>
    %24 = vector.broadcast %3 : vector<1x32xf32> to vector<8x32xf32>
    %25 = arith.addf %23, %24 : vector<8x32xf32>
    %c0_10 = arith.constant 0 : index
    %c0_11 = arith.constant 0 : index
    %26 = vector.load %arg5[%c0_10, %c0_11] : memref<32x96xf32, #tpu.memory_space<vmem>>, vector<32x96xf32>
    %cst_12 = arith.constant dense<0.000000e+00> : vector<8x96xf32>
    %27 = tpu.matmul %25, %26, %cst_12 {dimension_numbers = #tpu.dot_dimension_numbers<[1], [0], [0], [1], [0, 0, 1, 1], [], []>} : vector<8x32xf32>, vector<32x96xf32>, vector<8x96xf32> -> vector<8x96xf32>
    %c0_13 = arith.constant 0 : index
    %c0_14 = arith.constant 0 : index
    %28 = vector.load %arg6[%c0_13, %c0_14] : memref<1x96xf32, #tpu.memory_space<vmem>>, vector<1x96xf32>
    %29 = vector.broadcast %28 : vector<1x96xf32> to vector<8x96xf32>
    %30 = arith.addf %27, %29 : vector<8x96xf32>
    %31 = vector.extract_strided_slice %30 {offsets = [0, 0], sizes = [8, 32], strides = [1, 1]} : vector<8x96xf32> to vector<8x32xf32>
    %cst_15 = arith.constant 0.353553385 : f32
    %32 = vector.broadcast %cst_15 : f32 to vector<8x32xf32>
    %33 = arith.mulf %31, %32 : vector<8x32xf32>
    %34 = vector.extract_strided_slice %33 {offsets = [0, 0], sizes = [8, 8], strides = [1, 1]} : vector<8x32xf32> to vector<8x8xf32>
    %35 = vector.extract_strided_slice %33 {offsets = [0, 8], sizes = [8, 8], strides = [1, 1]} : vector<8x32xf32> to vector<8x8xf32>
    %36 = vector.extract_strided_slice %33 {offsets = [0, 16], sizes = [8, 8], strides = [1, 1]} : vector<8x32xf32> to vector<8x8xf32>
    %37 = vector.extract_strided_slice %33 {offsets = [0, 24], sizes = [8, 8], strides = [1, 1]} : vector<8x32xf32> to vector<8x8xf32>
    %38 = vector.shape_cast %34 : vector<8x8xf32> to vector<1x8x8xf32>
    %39 = vector.shape_cast %35 : vector<8x8xf32> to vector<1x8x8xf32>
    %40 = vector.shape_cast %36 : vector<8x8xf32> to vector<1x8x8xf32>
    %41 = vector.shape_cast %37 : vector<8x8xf32> to vector<1x8x8xf32>
    %42 = tpu.concatenate %38, %39, %40, %41 in 0 : vector<1x8x8xf32>, vector<1x8x8xf32>, vector<1x8x8xf32>, vector<1x8x8xf32> -> vector<4x8x8xf32>
    %c8_i32 = arith.constant 8 : i32
    %43 = arith.muli %arg1, %c8_i32 : i32
    %44 = tpu.assume_multiple %43, 8 : i32
    %45 = vector.extract_strided_slice %30 {offsets = [0, 32], sizes = [8, 64], strides = [1, 1]} : vector<8x96xf32> to vector<8x64xf32>
    %46 = arith.index_cast %44 : i32 to index
    %c0_16 = arith.constant 0 : index
    %47 = vector.load %arg16[%46, %c0_16] : memref<8x64xf32, #tpu.memory_space<vmem>>, vector<8x64xf32>
    tpu.vector_store %arg16[%46, %c0_16], %45 {strides = array<i32>} : memref<8x64xf32, #tpu.memory_space<vmem>>, vector<8x64xf32>,
    %c8_i32_17 = arith.constant 8 : i32
    %48 = arith.muli %arg1, %c8_i32_17 : i32
    %49 = tpu.iota {dimensions = array<i32: 0>} : vector<8x8xi32>
    %50 = vector.broadcast %48 : i32 to vector<8x8xi32>
    %51 = arith.addi %50, %49 : vector<8x8xi32>
    %52 = tpu.iota {dimensions = array<i32: 1>} : vector<8x8xi32>
    %53 = arith.subi %51, %52 : vector<8x8xi32>
    %c1_i32 = arith.constant 1 : i32
    %54 = arith.addi %arg1, %c1_i32 : i32
    %c1_i32_18 = arith.constant 1 : i32
    %55 = arith.muli %54, %c1_i32_18 : i32
    %cst_19 = arith.constant -1.000000e+30 : f32
    %56 = vector.broadcast %cst_19 : f32 to vector<4x8x1xf32>
    %cst_20 = arith.constant 0.000000e+00 : f32
    %57 = vector.broadcast %cst_20 : f32 to vector<4x8x1xf32>
    %cst_21 = arith.constant 0.000000e+00 : f32
    %58 = vector.broadcast %cst_21 : f32 to vector<4x8x8xf32>
    %c0_i32 = arith.constant 0 : i32
    %59 = arith.subi %55, %c0_i32 : i32
    %60 = arith.addi %c0_i32, %59 : i32
    %c1_i32_22 = arith.constant 1 : i32
    %61:3 = scf.for %arg17 = %c0_i32 to %60 step %c1_i32_22 iter_args(%arg18 = %56, %arg19 = %57, %arg20 = %58) -> (vector<4x8x1xf32>, vector<4x8x1xf32>, vector<4x8x8xf32>)  : i32 {
      %c8_i32_60 = arith.constant 8 : i32
      %136 = arith.muli %arg17, %c8_i32_60 : i32
      %137 = tpu.assume_multiple %136, 8 : i32
      %138 = arith.index_cast %137 : i32 to index
      %c0_61 = arith.constant 0 : index
      %139 = vector.load %arg16[%138, %c0_61] : memref<8x64xf32, #tpu.memory_space<vmem>>, vector<8x64xf32>
      %140 = vector.extract_strided_slice %139 {offsets = [0, 0], sizes = [8, 8], strides = [1, 1]} : vector<8x64xf32> to vector<8x8xf32>
      %141 = vector.extract_strided_slice %139 {offsets = [0, 8], sizes = [8, 8], strides = [1, 1]} : vector<8x64xf32> to vector<8x8xf32>
      %142 = vector.extract_strided_slice %139 {offsets = [0, 16], sizes = [8, 8], strides = [1, 1]} : vector<8x64xf32> to vector<8x8xf32>
      %143 = vector.extract_strided_slice %139 {offsets = [0, 24], sizes = [8, 8], strides = [1, 1]} : vector<8x64xf32> to vector<8x8xf32>
      %144 = vector.shape_cast %140 : vector<8x8xf32> to vector<1x8x8xf32>
      %145 = vector.shape_cast %141 : vector<8x8xf32> to vector<1x8x8xf32>
      %146 = vector.shape_cast %142 : vector<8x8xf32> to vector<1x8x8xf32>
      %147 = vector.shape_cast %143 : vector<8x8xf32> to vector<1x8x8xf32>
      %148 = tpu.concatenate %144, %145, %146, %147 in 0 : vector<1x8x8xf32>, vector<1x8x8xf32>, vector<1x8x8xf32>, vector<1x8x8xf32> -> vector<4x8x8xf32>
      %149 = vector.extract_strided_slice %139 {offsets = [0, 32], sizes = [8, 8], strides = [1, 1]} : vector<8x64xf32> to vector<8x8xf32>
      %150 = vector.extract_strided_slice %139 {offsets = [0, 40], sizes = [8, 8], strides = [1, 1]} : vector<8x64xf32> to vector<8x8xf32>
      %151 = vector.extract_strided_slice %139 {offsets = [0, 48], sizes = [8, 8], strides = [1, 1]} : vector<8x64xf32> to vector<8x8xf32>
      %152 = vector.extract_strided_slice %139 {offsets = [0, 56], sizes = [8, 8], strides = [1, 1]} : vector<8x64xf32> to vector<8x8xf32>
      %153 = vector.shape_cast %149 : vector<8x8xf32> to vector<1x8x8xf32>
      %154 = vector.shape_cast %150 : vector<8x8xf32> to vector<1x8x8xf32>
      %155 = vector.shape_cast %151 : vector<8x8xf32> to vector<1x8x8xf32>
      %156 = vector.shape_cast %152 : vector<8x8xf32> to vector<1x8x8xf32>
      %157 = tpu.concatenate %153, %154, %155, %156 in 0 : vector<1x8x8xf32>, vector<1x8x8xf32>, vector<1x8x8xf32>, vector<1x8x8xf32> -> vector<4x8x8xf32>
      "tpu.trace_start"() <{level = 10 : i32, message = "htd,hsd->hts"}> : () -> ()
      %cst_62 = arith.constant dense<0.000000e+00> : vector<4x8x8xf32>
      %158 = tpu.matmul %42, %148, %cst_62 {dimension_numbers = #tpu.dot_dimension_numbers<[2], [2], [1], [1], [0, 0, 0, 1, 1, 1], [0], [0]>} : vector<4x8x8xf32>, vector<4x8x8xf32>, vector<4x8x8xf32> -> vector<4x8x8xf32>
      "tpu.trace_stop"() : () -> ()
      %c8_i32_63 = arith.constant 8 : i32
      %159 = arith.muli %arg17, %c8_i32_63 : i32
      %160 = vector.broadcast %159 : i32 to vector<8x8xi32>
      %161 = arith.cmpi sge, %53, %160 : vector<8x8xi32>
      %162 = vector.shape_cast %161 : vector<8x8xi1> to vector<1x8x8xi1>
      %cst_64 = arith.constant -1.000000e+30 : f32
      %163 = vector.shape_cast %162 : vector<1x8x8xi1> to vector<1x8x8xi1>
      %164 = vector.broadcast %163 : vector<1x8x8xi1> to vector<4x8x8xi1>
      %165 = vector.broadcast %cst_64 : f32 to vector<4x8x8xf32>
      %166 = arith.select %164, %158, %165 : vector<4x8x8xi1>, vector<4x8x8xf32>
      %cst_65 = arith.constant dense<0xFF800000> : vector<4x8xf32>
      %167 = vector.multi_reduction <maximumf>, %166, %cst_65 [2] : vector<4x8x8xf32> to vector<4x8xf32>
      %168 = vector.shape_cast %167 : vector<4x8xf32> to vector<4x8x1xf32>
      %169 = arith.maximumf %arg18, %168 : vector<4x8x1xf32>
      %170 = arith.subf %arg18, %169 : vector<4x8x1xf32>
      %171 = math.exp %170 : vector<4x8x1xf32>
      %172 = vector.broadcast %169 : vector<4x8x1xf32> to vector<4x8x8xf32>
      %173 = arith.subf %166, %172 : vector<4x8x8xf32>
      %174 = math.exp %173 : vector<4x8x8xf32>
      %175 = arith.mulf %171, %arg19 : vector<4x8x1xf32>
      %cst_66 = arith.constant dense<0.000000e+00> : vector<4x8xf32>
      %176 = vector.multi_reduction <add>, %174, %cst_66 [2] : vector<4x8x8xf32> to vector<4x8xf32>
      %177 = vector.shape_cast %176 : vector<4x8xf32> to vector<4x8x1xf32>
      %178 = arith.addf %175, %177 : vector<4x8x1xf32>
      %179 = vector.broadcast %171 : vector<4x8x1xf32> to vector<4x8x8xf32>
      %180 = arith.mulf %179, %arg20 : vector<4x8x8xf32>
      "tpu.trace_start"() <{level = 10 : i32, message = "hts,hsd->htd"}> : () -> ()
      %cst_67 = arith.constant dense<0.000000e+00> : vector<4x8x8xf32>
      %181 = tpu.matmul %174, %157, %cst_67 {dimension_numbers = #tpu.dot_dimension_numbers<[2], [1], [1], [2], [0, 0, 0, 1, 1, 2], [0], [0]>} : vector<4x8x8xf32>, vector<4x8x8xf32>, vector<4x8x8xf32> -> vector<4x8x8xf32>
      "tpu.trace_stop"() : () -> ()
      %182 = arith.addf %180, %181 : vector<4x8x8xf32>
      scf.yield %169, %178, %182 : vector<4x8x1xf32>, vector<4x8x1xf32>, vector<4x8x8xf32>
    }
    %62 = tpu.reciprocal %61#1 {approx = true} : vector<4x8x1xf32> -> vector<4x8x1xf32>
    %63 = vector.broadcast %62 : vector<4x8x1xf32> to vector<4x8x8xf32>
    %64 = arith.mulf %61#2, %63 : vector<4x8x8xf32>
    %cst_23 = arith.constant 0.000000e+00 : f32
    %65 = vector.broadcast %cst_23 : f32 to vector<8x32xf32>
    %c0_24 = arith.constant 0 : index
    %c0_25 = arith.constant 0 : index
    %66 = vector.load %arg8[%c0_24, %c0_25] : memref<1x32xf32, #tpu.memory_space<vmem>>, vector<1x32xf32>
    %67 = vector.broadcast %66 : vector<1x32xf32> to vector<8x32xf32>
    %68 = arith.addf %65, %67 : vector<8x32xf32>
    %69 = vector.extract_strided_slice %64 {offsets = [0, 0, 0], sizes = [1, 8, 8], strides = [1, 1, 1]} : vector<4x8x8xf32> to vector<1x8x8xf32>
    %70 = vector.shape_cast %69 : vector<1x8x8xf32> to vector<8x8xf32>
    %c0_26 = arith.constant 0 : index
    %c0_27 = arith.constant 0 : index
    %71 = vector.load %arg7[%c0_26, %c0_27] : memref<32x32xf32, #tpu.memory_space<vmem>>, vector<8x32xf32>
    %cst_28 = arith.constant dense<0.000000e+00> : vector<8x32xf32>
    %72 = tpu.matmul %70, %71, %cst_28 {dimension_numbers = #tpu.dot_dimension_numbers<[1], [0], [0], [1], [0, 0, 1, 1], [], []>} : vector<8x8xf32>, vector<8x32xf32>, vector<8x32xf32> -> vector<8x32xf32>
    %73 = arith.addf %68, %72 : vector<8x32xf32>
    %74 = vector.extract_strided_slice %64 {offsets = [1, 0, 0], sizes = [1, 8, 8], strides = [1, 1, 1]} : vector<4x8x8xf32> to vector<1x8x8xf32>
    %75 = vector.shape_cast %74 : vector<1x8x8xf32> to vector<8x8xf32>
    %c8 = arith.constant 8 : index
    %c0_29 = arith.constant 0 : index
    %76 = vector.load %arg7[%c8, %c0_29] : memref<32x32xf32, #tpu.memory_space<vmem>>, vector<8x32xf32>
    %cst_30 = arith.constant dense<0.000000e+00> : vector<8x32xf32>
    %77 = tpu.matmul %75, %76, %cst_30 {dimension_numbers = #tpu.dot_dimension_numbers<[1], [0], [0], [1], [0, 0, 1, 1], [], []>} : vector<8x8xf32>, vector<8x32xf32>, vector<8x32xf32> -> vector<8x32xf32>
    %78 = arith.addf %73, %77 : vector<8x32xf32>
    %79 = vector.extract_strided_slice %64 {offsets = [2, 0, 0], sizes = [1, 8, 8], strides = [1, 1, 1]} : vector<4x8x8xf32> to vector<1x8x8xf32>
    %80 = vector.shape_cast %79 : vector<1x8x8xf32> to vector<8x8xf32>
    %c16 = arith.constant 16 : index
    %c0_31 = arith.constant 0 : index
    %81 = vector.load %arg7[%c16, %c0_31] : memref<32x32xf32, #tpu.memory_space<vmem>>, vector<8x32xf32>
    %cst_32 = arith.constant dense<0.000000e+00> : vector<8x32xf32>
    %82 = tpu.matmul %80, %81, %cst_32 {dimension_numbers = #tpu.dot_dimension_numbers<[1], [0], [0], [1], [0, 0, 1, 1], [], []>} : vector<8x8xf32>, vector<8x32xf32>, vector<8x32xf32> -> vector<8x32xf32>
    %83 = arith.addf %78, %82 : vector<8x32xf32>
    %84 = vector.extract_strided_slice %64 {offsets = [3, 0, 0], sizes = [1, 8, 8], strides = [1, 1, 1]} : vector<4x8x8xf32> to vector<1x8x8xf32>
    %85 = vector.shape_cast %84 : vector<1x8x8xf32> to vector<8x8xf32>
    %c24 = arith.constant 24 : index
    %c0_33 = arith.constant 0 : index
    %86 = vector.load %arg7[%c24, %c0_33] : memref<32x32xf32, #tpu.memory_space<vmem>>, vector<8x32xf32>
    %cst_34 = arith.constant dense<0.000000e+00> : vector<8x32xf32>
    %87 = tpu.matmul %85, %86, %cst_34 {dimension_numbers = #tpu.dot_dimension_numbers<[1], [0], [0], [1], [0, 0, 1, 1], [], []>} : vector<8x8xf32>, vector<8x32xf32>, vector<8x32xf32> -> vector<8x32xf32>
    %88 = arith.addf %83, %87 : vector<8x32xf32>
    %89 = arith.addf %1, %88 : vector<8x32xf32>
    %c0_35 = arith.constant 0 : index
    %c0_36 = arith.constant 0 : index
    %90 = vector.load %arg9[%c0_35, %c0_36] : memref<1x32xf32, #tpu.memory_space<vmem>>, vector<1x32xf32>
    %c0_37 = arith.constant 0 : index
    %c0_38 = arith.constant 0 : index
    %91 = vector.load %arg10[%c0_37, %c0_38] : memref<1x32xf32, #tpu.memory_space<vmem>>, vector<1x32xf32>
    %cst_39 = arith.constant dense<0.000000e+00> : vector<8xf32>
    %92 = vector.multi_reduction <add>, %89, %cst_39 [1] : vector<8x32xf32> to vector<8xf32>
    %93 = vector.shape_cast %92 : vector<8xf32> to vector<8x1xf32>
    %cst_40 = arith.constant 3.200000e+01 : f32
    %94 = vector.broadcast %cst_40 : f32 to vector<8x1xf32>
    %95 = arith.divf %93, %94 : vector<8x1xf32>
    %96 = vector.broadcast %95 : vector<8x1xf32> to vector<8x32xf32>
    %97 = arith.subf %89, %96 : vector<8x32xf32>
    %98 = arith.mulf %97, %97 : vector<8x32xf32>
    %cst_41 = arith.constant dense<0.000000e+00> : vector<8xf32>
    %99 = vector.multi_reduction <add>, %98, %cst_41 [1] : vector<8x32xf32> to vector<8xf32>
    %100 = vector.shape_cast %99 : vector<8xf32> to vector<8x1xf32>
    %cst_42 = arith.constant 3.200000e+01 : f32
    %101 = vector.broadcast %cst_42 : f32 to vector<8x1xf32>
    %102 = arith.divf %100, %101 : vector<8x1xf32>
    %103 = vector.broadcast %95 : vector<8x1xf32> to vector<8x32xf32>
    %104 = arith.subf %89, %103 : vector<8x32xf32>
    %cst_43 = arith.constant 9.99999974E-6 : f32
    %105 = vector.broadcast %cst_43 : f32 to vector<8x1xf32>
    %106 = arith.addf %102, %105 : vector<8x1xf32>
    %107 = math.rsqrt %106 : vector<8x1xf32>
    %108 = vector.broadcast %107 : vector<8x1xf32> to vector<8x32xf32>
    %109 = arith.mulf %104, %108 : vector<8x32xf32>
    %110 = vector.broadcast %90 : vector<1x32xf32> to vector<8x32xf32>
    %111 = arith.mulf %109, %110 : vector<8x32xf32>
    %112 = vector.broadcast %91 : vector<1x32xf32> to vector<8x32xf32>
    %113 = arith.addf %111, %112 : vector<8x32xf32>
    %c0_44 = arith.constant 0 : index
    %c0_45 = arith.constant 0 : index
    %114 = vector.load %arg11[%c0_44, %c0_45] : memref<32x64xf32, #tpu.memory_space<vmem>>, vector<32x64xf32>
    %cst_46 = arith.constant dense<0.000000e+00> : vector<8x64xf32>
    %115 = tpu.matmul %113, %114, %cst_46 {dimension_numbers = #tpu.dot_dimension_numbers<[1], [0], [0], [1], [0, 0, 1, 1], [], []>} : vector<8x32xf32>, vector<32x64xf32>, vector<8x64xf32> -> vector<8x64xf32>
    %c0_47 = arith.constant 0 : index
    %c0_48 = arith.constant 0 : index
    %116 = vector.load %arg12[%c0_47, %c0_48] : memref<1x64xf32, #tpu.memory_space<vmem>>, vector<1x64xf32>
    %117 = vector.broadcast %116 : vector<1x64xf32> to vector<8x64xf32>
    %118 = arith.addf %115, %117 : vector<8x64xf32>
    %cst_49 = arith.constant 5.000000e-01 : f32
    %119 = vector.broadcast %cst_49 : f32 to vector<8x64xf32>
    %120 = arith.mulf %119, %118 : vector<8x64xf32>
    %cst_50 = arith.constant 0.707106769 : f32
    %121 = vector.broadcast %cst_50 : f32 to vector<8x64xf32>
    %122 = arith.mulf %118, %121 : vector<8x64xf32>
    %123 = math.erf %122 : vector<8x64xf32>
    %cst_51 = arith.constant 1.000000e+00 : f32
    %124 = vector.broadcast %cst_51 : f32 to vector<8x64xf32>
    %125 = arith.addf %124, %123 : vector<8x64xf32>
    %126 = arith.mulf %120, %125 : vector<8x64xf32>
    %c0_52 = arith.constant 0 : index
    %c0_53 = arith.constant 0 : index
    %127 = vector.load %arg13[%c0_52, %c0_53] : memref<64x32xf32, #tpu.memory_space<vmem>>, vector<64x32xf32>
    %cst_54 = arith.constant dense<0.000000e+00> : vector<8x32xf32>
    %128 = tpu.matmul %126, %127, %cst_54 {dimension_numbers = #tpu.dot_dimension_numbers<[1], [0], [0], [1], [0, 0, 1, 1], [], []>} : vector<8x64xf32>, vector<64x32xf32>, vector<8x32xf32> -> vector<8x32xf32>
    %c0_55 = arith.constant 0 : index
    %c0_56 = arith.constant 0 : index
    %129 = vector.load %arg14[%c0_55, %c0_56] : memref<1x32xf32, #tpu.memory_space<vmem>>, vector<1x32xf32>
    %130 = vector.broadcast %129 : vector<1x32xf32> to vector<8x32xf32>
    %131 = arith.addf %128, %130 : vector<8x32xf32>
    %132 = arith.addf %89, %131 : vector<8x32xf32>
    %c0_57 = arith.constant 0 : index
    %c0_58 = arith.constant 0 : index
    %c0_59 = arith.constant 0 : index
    %133 = vector.load %arg15[%c0_57, %c0_58, %c0_59] : memref<1x8x32xf32, #tpu.memory_space<vmem>>, vector<1x8x32xf32>
    %134 = vector.shape_cast %133 : vector<1x8x32xf32> to vector<8x32xf32>
    %135 = vector.shape_cast %132 : vector<8x32xf32> to vector<1x8x32xf32>
    tpu.vector_store %arg15[%c0_57, %c0_58, %c0_59], %135 {strides = array<i32>} : memref<1x8x32xf32, #tpu.memory_space<vmem>>, vector<1x8x32xf32>,
    return
  }
  func.func @transform_0(%arg0: i32, %arg1: i32) -> (i32, i32, i32) {
    %c0_i32 = arith.constant 0 : i32
    %c0_i32_0 = arith.constant 0 : i32
    return %arg0, %arg1, %c0_i32 : i32, i32, i32
  }
  func.func @transform_1(%arg0: i32, %arg1: i32) -> (i32, i32) {
    %c0_i32 = arith.constant 0 : i32
    %c0_i32_0 = arith.constant 0 : i32
    %c0_i32_1 = arith.constant 0 : i32
    return %c0_i32, %c0_i32_0 : i32, i32
  }
  func.func @transform_2(%arg0: i32, %arg1: i32) -> (i32, i32) {
    %c0_i32 = arith.constant 0 : i32
    %c0_i32_0 = arith.constant 0 : i32
    %c0_i32_1 = arith.constant 0 : i32
    return %c0_i32, %c0_i32_0 : i32, i32
  }
  func.func @transform_3(%arg0: i32, %arg1: i32) -> (i32, i32) {
    %c0_i32 = arith.constant 0 : i32
    %c0_i32_0 = arith.constant 0 : i32
    %c0_i32_1 = arith.constant 0 : i32
    return %c0_i32, %c0_i32_0 : i32, i32
  }
  func.func @transform_4(%arg0: i32, %arg1: i32) -> (i32, i32) {
    %c0_i32 = arith.constant 0 : i32
    %c0_i32_0 = arith.constant 0 : i32
    %c0_i32_1 = arith.constant 0 : i32
    return %c0_i32, %c0_i32_0 : i32, i32
  }
  func.func @transform_5(%arg0: i32, %arg1: i32) -> (i32, i32) {
    %c0_i32 = arith.constant 0 : i32
    %c0_i32_0 = arith.constant 0 : i32
    %c0_i32_1 = arith.constant 0 : i32
    return %c0_i32, %c0_i32_0 : i32, i32
  }
  func.func @transform_6(%arg0: i32, %arg1: i32) -> (i32, i32) {
    %c0_i32 = arith.constant 0 : i32
    %c0_i32_0 = arith.constant 0 : i32
    %c0_i32_1 = arith.constant 0 : i32
    return %c0_i32, %c0_i32_0 : i32, i32
  }
  func.func @transform_7(%arg0: i32, %arg1: i32) -> (i32, i32) {
    %c0_i32 = arith.constant 0 : i32
    %c0_i32_0 = arith.constant 0 : i32
    %c0_i32_1 = arith.constant 0 : i32
    return %c0_i32, %c0_i32_0 : i32, i32
  }
  func.func @transform_8(%arg0: i32, %arg1: i32) -> (i32, i32) {
    %c0_i32 = arith.constant 0 : i32
    %c0_i32_0 = arith.constant 0 : i32
    %c0_i32_1 = arith.constant 0 : i32
    return %c0_i32, %c0_i32_0 : i32, i32
  }
  func.func @transform_9(%arg0: i32, %arg1: i32) -> (i32, i32) {
    %c0_i32 = arith.constant 0 : i32
    %c0_i32_0 = arith.constant 0 : i32
    %c0_i32_1 = arith.constant 0 : i32
    return %c0_i32, %c0_i32_0 : i32, i32
  }
  func.func @transform_10(%arg0: i32, %arg1: i32) -> (i32, i32) {
    %c0_i32 = arith.constant 0 : i32
    %c0_i32_0 = arith.constant 0 : i32
    %c0_i32_1 = arith.constant 0 : i32
    return %c0_i32, %c0_i32_0 : i32, i32
  }
  func.func @transform_11(%arg0: i32, %arg1: i32) -> (i32, i32) {
    %c0_i32 = arith.constant 0 : i32
    %c0_i32_0 = arith.constant 0 : i32
    %c0_i32_1 = arith.constant 0 : i32
    return %c0_i32, %c0_i32_0 : i32, i32
  }
  func.func @transform_12(%arg0: i32, %arg1: i32) -> (i32, i32) {
    %c0_i32 = arith.constant 0 : i32
    %c0_i32_0 = arith.constant 0 : i32
    %c0_i32_1 = arith.constant 0 : i32
    return %c0_i32, %c0_i32_0 : i32, i32
  }
  func.func @transform_13(%arg0: i32, %arg1: i32) -> (i32, i32, i32) {
    %c0_i32 = arith.constant 0 : i32
    %c0_i32_0 = arith.constant 0 : i32
    return %arg0, %arg1, %c0_i32 : i32, i32, i32
  }
}

</mosaic_0001>

<bundles_post_ra>
// kernel: tpu_custom_call.1
= control target key start
LH: loop header
LB: loop body
LE: loop exit
PB: predicated region body
PF: predicated region fallthrough
CT: control target
= control target key end

     0   :  { %s3185_s0 = inlined_call_operand.hbm [shape: f32[2,8,32], index: 0, kind: input, shape index: {}]   ;;  %s3186_s1 = inlined_call_operand.vmem [shape: f32[1,32], index: 1, kind: input, shape index: {}]   ;;  %s3187_s2 = inlined_call_operand.vmem [shape: f32[1,32], index: 2, kind: input, shape index: {}]   ;;  %s3188_s3 = inlined_call_operand.vmem [shape: f32[32,96], index: 3, kind: input, shape index: {}]   ;;  %s3189_s4 = inlined_call_operand.vmem [shape: f32[1,96], index: 4, kind: input, shape index: {}]   ;;  %s3190_s5 = inlined_call_operand.vmem [shape: f32[32,32], index: 5, kind: input, shape index: {}]   ;;  %s3191_s6 = inlined_call_operand.vmem [shape: f32[1,32], index: 6, kind: input, shape index: {}]   ;;  %s3192_s7 = inlined_call_operand.vmem [shape: f32[1,32], index: 7, kind: input, shape index: {}]   ;;  %s3193_s8 = inlined_call_operand.vmem [shape: f32[1,32], index: 8, kind: input, shape index: {}]   ;;  %s3194_s9 = inlined_call_operand.vmem [shape: f32[32,64], index: 9, kind: input, shape index: {}]   ;;  %s3195_s10 = inlined_call_operand.vmem [shape: f32[1,64], index: 10, kind: input, shape index: {}]   ;;  %s3196_s11 = inlined_call_operand.vmem [shape: f32[64,32], index: 11, kind: input, shape index: {}]   ;;  %s3197_s12 = inlined_call_operand.vmem [shape: f32[1,32], index: 12, kind: input, shape index: {}]   ;;  %s3198_s13 = inlined_call_operand.hbm [shape: f32[2,8,32], index: 13, kind: output, shape index: {}]  }
   0x1   :  { %3202 = sst [smem:[#allocation12_spill]] %s3195_s10 }
   0x2   :  { %3203 = sst [smem:[#allocation13_spill]] %s3197_s12 }
   0x3   :  { %3204 = sst [smem:[#allocation14_spill]] %s3198_s13 }
   0x4   :  { %18 = vsyncpa [#allocation4], 0 }
   0x5   :  { %20 = vsyncpa [#allocation4 + $0x1], 0 }
   0x6   :  { %21 = vsyncpa [#allocation5], 0 }
   0x7   :  { %23 = vsyncpa [#allocation5 + $0x1], 0  ;;  %s2675_s25 = smov 0   ;;  %s2677_s26 = smov 0  }
   0x8   :  { %s2679_s27 = smov 0   ;;  %s2681_s28 = smov 0  }
   0x9   :  { %s2683_s29 = smov 0   ;;  %s2685_s30 = smov 0  }
   0xa LB: > { %3205 = sst [smem:[#allocation9_spill]] %s2517_s25  ;;  %s1984_s14 = sadd.s32 4294967295, %s2537_s30   ;;  %s2537_s30 = sphi %s2685_s30, %s29_s30   ;;  %s2533_s29 = sphi %s2683_s29, %s3241_s29   ;;  %s2529_s28 = sphi %s2681_s28, %s3240_s28   ;;  %s2525_s27 = sphi %s2679_s27, %s3239_s27   ;;  %s2521_s26 = sphi %s2677_s26, %s3238_s26   ;;  %s2517_s25 = sphi %s2675_s25, %s3237_s25  }
   0xb   : > { %s1985_s15 = sadd.s32 4294967294, %s2537_s30   ;;  %s41_s16 = sadd.s32 1, %s2533_s29 }
   0xc   : > { %s50_s17 = sadd.s32 1, %s2525_s27  ;;  %p43_p0 = scmp.ge.s32.totalorder %s41_s16, 2 }
   0xd   : > { %p57_p1 = scmp.ne.s32.totalorder %s2525_s27, %s2521_s26  ;;  %p58_p2 = scmp.eq.s32.totalorder %s2537_s30, 0 }
   0xe   : > { %p63_p3 = scmp.ne.s32.totalorder %s2521_s26, %s2517_s25  ;;  %s3243_s16 = smov (%p43_p0, %s41_s16), 0 }
   0xf   : > { %3206 = sst [smem:[#allocation10_spill]] %s3243_s16  ;;  %p2716_p4 = por %p58_p2, %p57_p1 }
  0x10   : > { %p64_p5 = scmp.eq.s32.totalorder %s1984_s14, 0  ;;  %s45_s19 = ssub.s32 %s2533_s29, %s3243_s16 }
  0x11   : > { %p341_p6 = scmp.eq.s32.totalorder %s1984_s14, 1  ;;  %p48_p7 = scmp.eq.s32.totalorder %s45_s19, 0 }
  0x12   : > { %p2722_p8 = por %p64_p5, %p63_p3  ;;  %p347_p10 = scmp.eq.s32.totalorder %s1985_s15, 1 }
  0x13   : > { %p2726_p9 = por %p341_p6, %p57_p1  ;;  %p2181_p13 = scmp.lt.s32.totalorder %s2537_s30, 2 }
  0x14   : > { %s2731_s22 = scalar_select %p48_p7, %s2525_s27, %s50_s17  }
  0x15   : > { %p2733_p11 = por %p347_p10, %p63_p3  ;;  %s403_s24 = sand.u32 1, %s2525_s27  }
  0x16   : > { %3210 = sst [smem:[#allocation11_spill]] %s2731_s22  ;;  %s1988_s14 = sshll.u32 %s403_s24, 3 }
  0x17   : > { %s3211_s23 = scalar_select %p2733_p11, 1, 0 }
  0x18   : > { %s1989_s19 = sshll.u32 %s2533_s29, 7  ;;  %s407_s12 = scalar_lea.vmem [#allocation3], %s1988_s14 }
  0x19   : > { %s413_s13 = scalar_lea.hbm %s3185_s0, %s1989_s19  ;;  %s415_s10 = sshll.u32 %s407_s12, 4  ;;  %s416_s10 = int_to_ptr.vmem [resolvable:$true] %s415_s10 }
  0x1a   : > { %p2746_p0 = pnand %p2181_p13, %p2716_p4  ;;  %p1990_p1 = scmp.ge.s32.totalorder %s2537_s30, 1 }
  0x1b   : > { %p420_p2 = scmp.lt.s32.totalorder %s2537_s30, 3  ;;  %s404_s17 = scalar_lea.sflag [#allocation4], %s403_s24 }
  0x1c   : > { %p2379_p3 = pneg %p2746_p0  ;;  %s2390_s22 = scalar_lea.vmem %s416_s10, 128 }
  0x1d   : > { %p2391_p5 = scmp.ne.s32.totalorder %s416_s10, %s2390_s22  ;;  %s2591_s25 = smov [#allocation3]  }
  0x1e   : > { %s2395_s16 = sshll.u32 %s2591_s25, 4  ;;  %s2396_s16 = int_to_ptr.vmem [resolvable:$false] %s2395_s16 }
  0x1f   : > { %p2393_p6 = pnand %p2391_p5, %p2379_p3  ;;  %s2397_s12 = scalar_lea.vmem %s2396_s16, 256 }
  0x20   : > { %p2398_p10 = scmp.lt.s32.totalorder %s416_s10, %s2396_s16  ;;  %p2399_p12 = scmp.lt.s32.totalorder %s2397_s12, %s2390_s22 }
  0x21   : > { %p2394_p7 = pneg %p2393_p6 }
  0x22   : > { %p2400_p4 = por %p2399_p12, %p2398_p10 }
  0x24   : > { %p2401_p13 = pnand %p2400_p4, %p2394_p7 }
  0x26   : > { %2404 = shalt.err (!%p2401_p13)
}
  0x27   : > { %2176 = dma.hbm_to_vmem [thread:$0]  (!%p2746_p0), %s413_s13, 128, %s416_s10, %s404_s17  }
  0x28   : > { %p421_p11 = pnand %p1990_p1, %p420_p2 }
  0x29   : > { %s2761_s18 = sand.u32 (!%p421_p11), 1, %s2521_s26  }
  0x2a   : > { %424 = sbr.rel (%p421_p11) target bundleno = 2285 (0x8ed), region = 72  ;;  %s1991_s22 = sshll.u32 (!%p421_p11), %s2761_s18, 3 }
  0x2b   : > { %s427_s24 = scalar_lea.sflag (!%p421_p11), [#allocation4], %s2761_s18  ;;  %s430_s14 = scalar_lea.vmem (!%p421_p11), [#allocation3], %s1991_s22 }
  0x2f   : > { %2508 = dma.done.wait (%p2722_p8), %s427_s24, 128  }
  0x30   : > { %2510 = vsyncadd (%p2722_p8), %s427_s24, 4294967168  ;;  %vm476_vm0 = vcmask 261120   ;;  %v2771_v0 = vld [vmem:[%s430_s14] sm:$0xff]  ;;  %v508_v7 = vld [vmem:[%s3188_s3 + $0x18] sm:$0xff]  ;;  %v2592_v8 = vmov 0.0   ;;  %vm2593_vm1 = vmmov 0   ;;  %v605_v21 = vlaneseq }
  0x31   : > { %v477_v1 = vsel %vm476_vm0, %v2771_v0, 0.0  ;;  %2068 = vmatprep.subr.mxu0 %v2592_v8  ;;  %v507_v9 = vld [vmem:[%s3188_s3 + $0x10] sm:$0xff]  ;;  %2076 = vmatprep.mubr.msk.f32.mxu0 %vm2593_vm1, %v2592_v8  ;;  %v506_v10 = vld [vmem:[%s3188_s3 + $0x8] sm:$0xff]  ;;  %v505_v11 = vld [vmem:[%s3188_s3] sm:$0xff]  ;;  %s2594_s19 = smov 96   ;;  %s2595_s15 = smov 112  }
  0x32   : > { %478 = vadd.xlane.f32.xlu0 %v477_v1  ;;  %2069 = vmatpush3.msra.mxu0 %v508_v7  ;;  %v1993_v16 = vld [vmem:[%s3186_s1] ss:$0 sm:$0xff]  ;;  %v2802_v22 = vshrl.u32 %v605_v21, 7  ;;  %v2804_v23 = vand.u32 127, %v605_v21  ;;  %s2596_s17 = smov 120   ;;  %s2597_s25 = smov 104  }
  0x33   : > { %2070 = vmatprep.subr.mxu0 %v2592_v8  ;;  %v1994_v18 = vld [vmem:[%s3187_s2] ss:$0 sm:$0xff]  ;;  %vm603_vm2 = vcmask 523264   ;;  %s2825_s16 = scalar_lea.vmem [#allocation6], %s1991_s22  ;;  %v2827_v34 = vmov 0.0   ;;  %v2829_v35 = vmov 0.0  }
  0x34   : > { %2071 = vmatpush3.msra.mxu0 %v507_v9  ;;  %v611_v24 = vsub.s32 %v2802_v22, %v2804_v23  ;;  %v1995_v25 = vld [vmem:[%s3189_s4] ss:$0 sm:$0xff]  ;;  %v2831_v36 = vmov 0.0   ;;  %v2833_v37 = vmov 0.0   ;;  %v2835_v38 = vmov 0.0   ;;  %s2851_s22 = smov 0  }
  0x35   : > { %2072 = vmatprep.subr.mxu0 %v2592_v8  ;;  %v2837_v39 = vmov 0.0   ;;  %v2839_v40 = vmov 0.0   ;;  %v2841_v41 = vmov 0.0   ;;  %v2843_v42 = vmov -1e+30  }
  0x36   : > { %2073 = vmatpush3.msra.mxu0 %v506_v10  ;;  %v2845_v43 = vmov -1e+30   ;;  %v2847_v44 = vmov -1e+30   ;;  %v2849_v45 = vmov -1e+30  }
  0x37   : > { %2074 = vmatprep.subr.mxu0 %v2592_v8 }
  0x38   : > { %2075 = vmatpush3.msra.mxu0 %v505_v11 }
  0xbb   : > { %v479_v2 = vpop.xlane.xlu0 %478 }
  0xbc   : > { %v481_v3 = vmul.f32 0.03125, %v479_v2 }
  0xbe   : > { %v482_v4 = vsub.f32 %v2771_v0, %v481_v3 }
  0xc0   : > { %v483_v5 = vmul.f32 %v482_v4, %v482_v4 }
  0xc2   : > { %v484_v6 = vsel %vm476_vm0, %v483_v5, 0.0 }
  0xc3   : > { %485 = vadd.xlane.f32.xlu0 %v484_v6 }
 0x14c   : > { %v486_v12 = vpop.xlane.xlu0 %485 }
 0x14d   : > { %v487_v13 = vmul.f32 0.03125, %v486_v12 }
 0x14f   : > { %v488_v14 = vadd.f32 1e-05, %v487_v13 }
 0x151   : > { %2347 = vrsqrt.f32 %v488_v14 }
 0x15e   : > { %v2348_v15 = vpop.eup %2347 }
 0x15f   : > { %v490_v17 = vmul.f32 %v2348_v15, %v482_v4 }
 0x161   : > { %v497_v19 = vmul.f32 %v1993_v16, %v490_v17 }
 0x163   : > { %v504_v20 = vadd.f32 %v1994_v18, %v497_v19 }
 0x165   : > { %2077 = vmatmul.mubr.msk.f32.vlgmr.msra.gmra.mxu0 %vm476_vm0, %v504_v20 }
 0x225   : > { %v585_v26 = vpop.f32.mrf.mxu0 }
 0x226   : > { %v586_v27 = vadd.f32 %v1995_v25, %v585_v26 }
 0x227   : > { %v2078_v28 = vpop.f32.mrf.mxu0 }
 0x228   : > { %v2811_v29 = vmul.f32 0.35355338, %v586_v27  ;;  %599 = vrot.lane.b32.xlu1 %v586_v27, %s2594_s19 }
 0x22a   : > { %593 = vrot.lane.b32.xlu0 %v2811_v29, %s2595_s15 }
 0x22c   : > { %591 = vrot.lane.b32.xlu1 %v2811_v29, %s2596_s17 }
 0x230   : > { %595 = vrot.lane.b32.xlu1 %v2811_v29, %s2597_s25 }
 0x29a   : > { %v600_v30 = vpop.permute.xlu1 %599 }
 0x29b   : > { %604 = vst.msk [vmem:[#allocation2] sm:$0xff] %vm603_vm2, %v600_v30 }
 0x29c   : > { %v2817_v31 = vpop.permute.xlu0 %593 }
 0x29e   : > { %v2819_v32 = vpop.permute.xlu1 %591 }
 0x2a2   : > { %v2821_v33 = vpop.permute.xlu1 %595 }
 0x2a3 LB: >> { %v2598_v46 = vmov 0.0   ;;  %vm2599_vm3 = vmmov 0   ;;  %s1997_s12 = sshll.u32 %s2589_s22, 3  ;;  %vm641_vm4 = vcmask 64512   ;;  %s2600_s14 = smov 120   ;;  %s2589_s22 = sphi %s2851_s22, %s616_s22   ;;  %v2585_v45 = vphi %v2849_v45, %v3228_v45   ;;  %v2581_v44 = vphi %v2847_v44, %v3227_v44   ;;  %v2577_v43 = vphi %v2845_v43, %v3226_v43   ;;  %v2573_v42 = vphi %v2843_v42, %v3225_v42   ;;  %v2569_v41 = vphi %v2841_v41, %v3224_v41   ;;  %v2565_v40 = vphi %v2839_v40, %v3223_v40   ;;  %v2561_v39 = vphi %v2837_v39, %v3222_v39   ;;  %v2557_v38 = vphi %v2835_v38, %v3221_v38   ;;  %v2553_v37 = vphi %v2833_v37, %v3220_v37   ;;  %v2549_v36 = vphi %v2831_v36, %v3219_v36   ;;  %v2545_v35 = vphi %v2829_v35, %v3218_v35   ;;  %v2541_v34 = vphi %v2827_v34, %v3217_v34  }
 0x2a4   : >> { %2079 = vmatprep.subr.mxu0 %v2598_v46  ;;  %2081 = vmatprep.mubr.msk.f32.mxu0 %vm2599_vm3, %v2598_v46  ;;  %s632_s24 = scalar_lea.vmem [#allocation2], %s1997_s12  ;;  %s2601_s10 = smov 104   ;;  %v938_v51 = vstv %s1997_s12 }
 0x2a5   : >> { %2084 = vmatprep.subr.mxu1 %v2598_v46  ;;  %2086 = vmatprep.mubr.msk.f32.mxu1 %vm2599_vm3, %v2598_v46  ;;  %v633_v47 = vld [vmem:[%s632_s24] sm:$0xff]  ;;  %s2602_s13 = smov 112   ;;  %s2603_s20 = smov 96   ;;  %vm2932_vm5 = vcmp.ge.s32.totalorder %v611_v24, %v938_v51 }
 0x2a6   : >> { %635 = vrot.lane.b32.xlu0 %v633_v47, %s2600_s14  ;;  %2080 = vmatpush3.xpose.msk.msra.mxu0 %vm641_vm4, %v633_v47  ;;  %s616_s22 = sadd.s32 1, %s2589_s22  }
 0x2a7   : >> { %639 = vrot.lane.b32.xlu1 %v633_v47, %s2601_s10  ;;  %2089 = vmatprep.subr.mxu0 %v2598_v46  ;;  %p2999_p8 = scmp.ge.s32.totalorder %s616_s22, 1 }
 0x2a8   : > { %s3229_s10 = sld [smem:[#allocation12_spill]] (%p2999_p8)  ;;  %s2022_s15 = sshll.u32 (%p2999_p8), %s2529_s28, 7 }
 0x2a9   : >> { %2082 = vmatmul.mubr.msk.f32.vlgmr.msra.gmra.mxu0 %vm641_vm4, %v2811_v29  ;;  %v1410_v29 = vld [vmem:[%s3190_s5 + $0x8] sm:$0xff] (%p2999_p8)  ;;  %s3230_s19 = sld [smem:[#allocation13_spill]] (%p2999_p8)  ;;  %s1859_s17 = sshll.u32 (%p2999_p8), %s2825_s16, 4  ;;  %s1860_s17 = int_to_ptr.vmem [resolvable:$true] %s1859_s17 }
 0x2aa   : >> { %637 = vrot.lane.b32.xlu0 %v633_v47, %s2602_s13  ;;  %2091 = vmatprep.mubr.msk.f32.mxu0 %vm2599_vm3, %v2598_v46  ;;  %s3231_s22 = sld [smem:[#allocation14_spill]] (%p2999_p8)  ;;  %s1845_s14 = scalar_lea.sflag (%p2999_p8), [#allocation5], %s2761_s18 }
 0x2ab   : > { %s2604_s13 = smov (%p2999_p8), [#allocation6]  }
 0x2ac   : > { %s2409_s28 = sshll.u32 (%p2999_p8), %s2604_s13, 4  ;;  %s2410_s28 = int_to_ptr.vmem [resolvable:$false] %s2409_s28 }
 0x2ad   : > { %p2412_p1 = scmp.lt.s32.totalorder (%p2999_p8), %s1860_s17, %s2410_s28 }
 0x2ae   : >> { %1010 = vrot.lane.b32.xlu0 %v633_v47, %s2603_s20 }
 0x2b0   : > { %s1857_s24 = scalar_lea.hbm (%p2999_p8), %s3231_s22, %s2022_s15 }
 0x318   : >> { %v636_v48 = vpop.permute.xlu0 %635 }
 0x319   : >> { %2085 = vmatpush3.xpose.msk.msra.mxu1 %vm641_vm4, %v636_v48  ;;  %1086 = vrot.lane.b32.xlu1 %v636_v48, %s2603_s20  ;;  %v640_v49 = vpop.permute.xlu1 %639 }
 0x31a   : >> { %2094 = vmatprep.subr.mxu1 %v2598_v46 }
 0x31c   : >> { %2087 = vmatmul.mubr.msk.f32.vlgmr.msra.gmra.mxu1 %vm641_vm4, %v2819_v32  ;;  %v638_v50 = vpop.permute.xlu0 %637 }
 0x31d   : >> { %2090 = vmatpush3.xpose.msk.msra.mxu0 %vm641_vm4, %v638_v50  ;;  %2095 = vmatpush3.xpose.msk.msra.mxu1 %vm641_vm4, %v640_v49 }
 0x31e   : >> { %2096 = vmatprep.mubr.msk.f32.mxu1 %vm2599_vm3, %v2598_v46  ;;  %2104 = vmatprep.subr.mxu1 %v2598_v46 }
 0x31f   : >> { %2099 = vmatprep.subr.mxu0 %v2598_v46 }
 0x320   : >> { %2092 = vmatmul.mubr.msk.f32.vlgmr.msra.gmra.mxu0 %vm641_vm4, %v2817_v31  ;;  %2097 = vmatmul.mubr.msk.f32.vlgmr.msra.gmra.mxu1 %vm641_vm4, %v2821_v33  ;;  %v1011_v57 = vpop.permute.xlu0 %1010 }
 0x321   : >> { %2101 = vmatprep.mubr.msk.f32.mxu0 %vm2599_vm3, %v2598_v46  ;;  %2106 = vmatprep.mubr.msk.f32.mxu1 %vm2599_vm3, %v2598_v46 }
 0x322   : >> { %2100 = vmatpush3.msra.mxu0 %v1011_v57 }
 0x323   : >> { %2109 = vmatprep.subr.mxu0 %v2598_v46 }
 0x369   : >> { %v712_v53 = vpop.f32.mrf.mxu0 }
 0x36a   : >> { %v942_v54 = vsel %vm2932_vm5, %v712_v53, -1e+30 }
 0x36b   : >> { %v946_v55 = vsel %vm641_vm4, %v942_v54, -inf  ;;  %v2083_v56 = vpop.f32.mrf.mxu0 }
 0x36c   : >> { %947 = vmax.xlane.f32.xlu1 %v946_v55 }
 0x38b   : >> { %v1087_v58 = vpop.permute.xlu1 %1086 }
 0x38c   : >> { %2105 = vmatpush3.msra.mxu1 %v1087_v58 }
 0x38d   : >> { %2114 = vmatprep.subr.mxu1 %v2598_v46 }
 0x3dc   : >> { %v786_v59 = vpop.f32.mrf.mxu1 }
 0x3dd   : >> { %v943_v60 = vsel %vm2932_vm5, %v786_v59, -1e+30 }
 0x3de   : >> { %v2088_v61 = vpop.f32.mrf.mxu1  ;;  %v949_v62 = vsel %vm641_vm4, %v943_v60, -inf }
 0x3df   : >> { %950 = vmax.xlane.f32.xlu0 %v949_v62 }
 0x3e0   : >> { %v860_v63 = vpop.f32.mrf.mxu0  ;;  %v934_v1 = vpop.f32.mrf.mxu1 }
 0x3e1   : >> { %v944_v2 = vsel %vm2932_vm5, %v860_v63, -1e+30  ;;  %v945_v3 = vsel %vm2932_vm5, %v934_v1, -1e+30 }
 0x3e2   : >> { %v2093_v4 = vpop.f32.mrf.mxu0  ;;  %v2098_v5 = vpop.f32.mrf.mxu1  ;;  %v955_v6 = vsel %vm641_vm4, %v945_v3, -inf  ;;  %v952_v7 = vsel %vm641_vm4, %v944_v2, -inf }
 0x3e3   : >> { %956 = vmax.xlane.f32.xlu1 %v955_v6  ;;  %953 = vmax.xlane.f32.xlu0 %v952_v7 }
 0x3f4   : >> { %1162 = vrot.lane.b32.xlu1 %v638_v50, %s2603_s20 }
 0x3f5   : >> { %v948_v9 = vpop.xlane.xlu1 %947 }
 0x3f6   : >> { %v2952_v10 = vmax.f32 %v2585_v45, %v948_v9  }
 0x3f8   : >> { %v962_v11 = vsub.f32 %v2585_v45, %v2952_v10  ;;  %v974_v12 = vsub.f32 %v942_v54, %v2952_v10 }
 0x3f9   : >> { %1238 = vrot.lane.b32.xlu0 %v640_v49, %s2603_s20  ;;  %s2411_s20 = scalar_lea.vmem (%p2999_p8), %s2410_s28, 256 }
 0x3fa   : >> { %v978_v13 = vmul.f32 1.442695, %v974_v12  ;;  %v966_v55 = vmul.f32 1.442695, %v962_v11 }
 0x3fc   : >> { %2349 = vpow2.f32 %v978_v13 }
 0x409   : >> { %v2350_v14 = vpop.eup %2349 }
 0x40a   : >> { %2102 = vmatmul.mubr.msk.f32.vlgmr.msra.gmra.mxu0 %vm641_vm4, %v2350_v14  ;;  %v990_v15 = vsel %vm641_vm4, %v2350_v14, 0.0 }
 0x40b   : >> { %2111 = vmatprep.mubr.msk.f32.mxu0 %vm2599_vm3, %v2598_v46 }
 0x418   : >> { %991 = vadd.xlane.f32.xlu1 %v990_v15 }
 0x468   : >> { %v951_v16 = vpop.xlane.xlu0 %950 }
 0x469   : >> { %v2963_v17 = vmax.f32 %v2581_v44, %v951_v16  }
 0x46b   : >> { %v963_v18 = vsub.f32 %v2581_v44, %v2963_v17  ;;  %v975_v19 = vsub.f32 %v943_v60, %v2963_v17 }
 0x46c   : >> { %v957_v20 = vpop.xlane.xlu1 %956  ;;  %v954_v21 = vpop.xlane.xlu0 %953 }
 0x46d   : >> { %v980_v25 = vmul.f32 1.442695, %v975_v19  ;;  %v2969_v26 = vmax.f32 %v2573_v42, %v957_v20   ;;  %v2972_v27 = vmax.f32 %v2577_v43, %v954_v21   ;;  %v968_v63 = vmul.f32 1.442695, %v963_v18 }
 0x46f   : >> { %v965_v28 = vsub.f32 %v2573_v42, %v2969_v26  ;;  %v977_v30 = vsub.f32 %v945_v3, %v2969_v26  ;;  %v964_v45 = vsub.f32 %v2577_v43, %v2972_v27  ;;  %2351 = vpow2.f32 %v980_v25 }
 0x470   : >> { %v976_v44 = vsub.f32 %v944_v2, %v2972_v27  ;;  %v1163_v47 = vpop.permute.xlu1 %1162  ;;  %v1239_v51 = vpop.permute.xlu0 %1238 }
 0x471   : >> { %v984_v48 = vmul.f32 1.442695, %v977_v30  ;;  %2110 = vmatpush3.msra.mxu0 %v1163_v47  ;;  %v972_v1 = vmul.f32 1.442695, %v965_v28  ;;  %v970_v2 = vmul.f32 1.442695, %v964_v45  ;;  %v3228_v45 = vmov %v2952_v10 }
 0x472   : >> { %v982_v49 = vmul.f32 1.442695, %v976_v44  ;;  %v3227_v44 = vmov %v2963_v17  ;;  %2119 = vmatprep.subr.mxu0 (%p2999_p8), %v2592_v8  ;;  %v1334_v45 = vld [vmem:[%s3190_s5] sm:$0xff] (%p2999_p8)  ;;  %v1560_v10 = vld [vmem:[%s3190_s5 + $0x18] sm:$0xff] (%p2999_p8) }
 0x473   : >> { %2353 = vpow2.f32 %v984_v48  ;;  %v2010_v17 = vld [vmem:[%s3191_s6] ss:$0 sm:$0xff] (%p2999_p8) }
 0x474   : >> { %2355 = vpow2.f32 %v982_v49 }
 0x475   : >> { %2357 = vpow2.f32 %v966_v55 }
 0x476   : >> { %2359 = vpow2.f32 %v968_v63 }
 0x477   : >> { %2361 = vpow2.f32 %v972_v1 }
 0x478   : >> { %2363 = vpow2.f32 %v970_v2 }
 0x47c   : >> { %v2352_v50 = vpop.eup %2351 }
 0x47d   : >> { %2107 = vmatmul.mubr.msk.f32.vlgmr.msra.gmra.mxu1 %vm641_vm4, %v2352_v50  ;;  %v993_v42 = vsel %vm641_vm4, %v2352_v50, 0.0 }
 0x47e   : >> { %2115 = vmatpush3.msra.mxu1 %v1239_v51  ;;  %994 = vadd.xlane.f32.xlu0 %v993_v42  ;;  %v3225_v42 = vmov %v2969_v26 }
 0x47f   : >> { %2116 = vmatprep.mubr.msk.f32.mxu1 %vm2599_vm3, %v2598_v46  ;;  %2134 = vmatprep.subr.mxu1 (%p2999_p8), %v2592_v8 }
 0x480   : >> { %v2354_v43 = vpop.eup %2353 }
 0x481   : >> { %2117 = vmatmul.mubr.msk.f32.vlgmr.msra.gmra.mxu1 %vm641_vm4, %v2354_v43  ;;  %v999_v52 = vsel %vm641_vm4, %v2354_v43, 0.0  ;;  %v2356_v53 = vpop.eup %2355  ;;  %v3226_v43 = vmov %v2972_v27 }
 0x482   : >> { %1000 = vadd.xlane.f32.xlu1 %v999_v52  ;;  %2112 = vmatmul.mubr.msk.f32.vlgmr.msra.gmra.mxu0 %vm641_vm4, %v2356_v53  ;;  %v996_v54 = vsel %vm641_vm4, %v2356_v53, 0.0  ;;  %v2358_v56 = vpop.eup %2357 }
 0x483   : >> { %997 = vadd.xlane.f32.xlu0 %v996_v54  ;;  %v986_v57 = vmul.f32 %v2569_v41, %v2358_v56  ;;  %v1006_v46 = vmul.f32 %v2553_v37, %v2358_v56  ;;  %v2360_v3 = vpop.eup %2359  ;;  %2121 = vmatprep.mubr.msk.f32.mxu0 (%p2999_p8), %vm2593_vm1, %v2592_v8 }
 0x484   : >> { %v987_v4 = vmul.f32 %v2565_v40, %v2360_v3  ;;  %v2362_v5 = vpop.eup %2361  ;;  %v1007_v15 = vmul.f32 %v2549_v36, %v2360_v3  ;;  %2120 = vmatpush3.msra.mxu0 (%p2999_p8), %v1334_v45  ;;  %2135 = vmatpush3.msra.mxu1 (%p2999_p8), %v1560_v10 }
 0x485   : >> { %v2364_v41 = vpop.eup %2363  ;;  %v989_v9 = vmul.f32 %v2557_v38, %v2362_v5  ;;  %v1009_v20 = vmul.f32 %v2541_v34, %v2362_v5  ;;  %2124 = vmatprep.subr.mxu0 (%p2999_p8), %v2592_v8  ;;  %2136 = vmatprep.mubr.msk.f32.mxu1 (%p2999_p8), %vm2593_vm1, %v2592_v8 }
 0x486   : >> { %v988_v12 = vmul.f32 %v2561_v39, %v2364_v41  ;;  %v1008_v21 = vmul.f32 %v2545_v35, %v2364_v41  ;;  %2150 = vmatprep.subr.mxu1 (%p2999_p8), %v2592_v8 }
 0x4a1   : >> { %v992_v58 = vpop.xlane.xlu1 %991 }
 0x4a2   : >> { %v1002_v59 = vadd.f32 %v992_v58, %v986_v57  }
 0x4a4   : >> { %v3224_v41 = vmov %v1002_v59  ;;  %2365 = vrcp.f32 (%p2999_p8), %v1002_v59 }
 0x4b1   : > { %v2366_v22 = vpop.eup (%p2999_p8), %2365 }
 0x4ca   : >> { %v1082_v60 = vpop.f32.mrf.mxu0 }
 0x4cb   : >> { %v2990_v37 = vadd.f32 %v1082_v60, %v1006_v46   ;;  %v1668_v60 = vld [vmem:[%s3194_s9 + $0x18] sm:$0xff] (%p2999_p8) }
 0x4cc   : >> { %v2103_v62 = vpop.f32.mrf.mxu0 }
 0x4cd   : >> { %v3215_v61 = vmov %v2990_v37  ;;  %v1665_v62 = vld [vmem:[%s3194_s9] sm:$0xff] (%p2999_p8) }
 0x4ce   : > { %v1322_v24 = vmul.f32 (%p2999_p8), %v2366_v22, %v3215_v61 }
 0x4d0   : > { %2122 = vmatmul.mubr.msk.f32.vlgmr.msra.gmra.mxu0 (%p2999_p8), %vm641_vm4, %v1322_v24 }
 0x4d1   : > { %2125 = vmatpush3.msra.mxu0 (%p2999_p8), %v1410_v29  ;;  %2126 = vmatprep.mubr.msk.f32.mxu0 (%p2999_p8), %vm2593_vm1, %v2592_v8 }
 0x4d2   : > { %2129 = vmatprep.subr.mxu0 (%p2999_p8), %v2592_v8 }
 0x507   : >> { %v995_v6 = vpop.xlane.xlu0 %994 }
 0x508   : >> { %v1003_v7 = vadd.f32 %v995_v6, %v987_v4   ;;  %v2015_v4 = vld [vmem:[%s3192_s7] ss:$0 sm:$0xff] (%p2999_p8) }
 0x509   : > { %v2016_v6 = vld [vmem:[%s3193_s8] ss:$0 sm:$0xff] (%p2999_p8) }
 0x50a   : > { %2367 = vrcp.f32 (%p2999_p8), %v1003_v7 }
 0x50b   : >> { %v1001_v11 = vpop.xlane.xlu1 %1000 }
 0x50c   : >> { %v1005_v13 = vadd.f32 %v1001_v11, %v989_v9   ;;  %v998_v37 = vpop.xlane.xlu0 %997  ;;  %v1761_v9 = vld [vmem:[%s3196_s11 + $0x38] sm:$0xff] (%p2999_p8)  ;;  %v1760_v11 = vld [vmem:[%s3196_s11 + $0x30] sm:$0xff] (%p2999_p8) }
 0x50d   : >> { %v1004_v14 = vadd.f32 %v998_v37, %v988_v12   ;;  %v3220_v37 = vmov %v3215_v61  ;;  %v1666_v61 = vld [vmem:[%s3194_s9 + $0x8] sm:$0xff] (%p2999_p8) }
 0x50e   : > { %2369 = vrcp.f32 (%p2999_p8), %v1005_v13  ;;  %v1759_v12 = vld [vmem:[%s3196_s11 + $0x28] sm:$0xff] (%p2999_p8)  ;;  %v1757_v37 = vld [vmem:[%s3196_s11 + $0x18] sm:$0xff] (%p2999_p8) }
 0x50f   : >> { %v3222_v39 = vmov %v1004_v14  ;;  %2371 = vrcp.f32 (%p2999_p8), %v1004_v14  ;;  %v1756_v14 = vld [vmem:[%s3196_s11 + $0x10] sm:$0xff] (%p2999_p8) }
 0x517   : > { %v2368_v23 = vpop.eup (%p2999_p8), %2367 }
 0x51b   : > { %v2370_v31 = vpop.eup (%p2999_p8), %2369 }
 0x51c   : > { %v2372_v33 = vpop.eup (%p2999_p8), %2371 }
 0x53d   : >> { %v1158_v16 = vpop.f32.mrf.mxu1 }
 0x53e   : >> { %v1315_v18 = vadd.f32 %v1158_v16, %v1007_v15   ;;  %v1755_v15 = vld [vmem:[%s3196_s11 + $0x8] sm:$0xff] (%p2999_p8)  ;;  %v1754_v16 = vld [vmem:[%s3196_s11] sm:$0xff] (%p2999_p8) }
 0x53f   : >> { %v2108_v19 = vpop.f32.mrf.mxu1 }
 0x540   : >> { %v3219_v36 = vmov %v1315_v18  ;;  %v1323_v32 = vmul.f32 (%p2999_p8), %v2368_v23, %v1315_v18  ;;  %v2017_v18 = vld [vmem:[%s3229_s10] ss:$0 sm:$0xff] (%p2999_p8)  ;;  %s2405_s10 = scalar_lea.vmem (%p2999_p8), %s1860_s17, 128 }
 0x541   : >> { %v1310_v40 = vpop.f32.mrf.mxu1  ;;  %618 = sbr.rel (!%p2999_p8) target bundleno = 675 (0x2a3), region = 126  ;;  %p2406_p11 = scmp.ne.s32.totalorder (%p2999_p8), %s1860_s17, %s2405_s10 }
 0x542   : >> { %v1317_v25 = vadd.f32 %v1310_v40, %v1009_v20   ;;  %v1234_v28 = vpop.f32.mrf.mxu0  ;;  %v3223_v40 = vmov %v1003_v7  ;;  %2127 = vmatmul.mubr.msk.f32.vlgmr.msra.gmra.mxu0 (%p2999_p8), %vm641_vm4, %v1323_v32  ;;  %p2413_p2 = scmp.lt.s32.totalorder (%p2999_p8), %s2411_s20, %s2405_s10 }
 0x543   : >> { %v2118_v30 = vpop.f32.mrf.mxu1  ;;  %v1316_v47 = vadd.f32 %v1234_v28, %v1008_v21   ;;  %2131 = vmatprep.mubr.msk.f32.mxu0 (%p2999_p8), %vm2593_vm1, %v2592_v8  ;;  %p2407_p12 = pnand (%p2999_p8), %p2406_p11, %p2726_p9 }
 0x544   : >> { %v2113_v38 = vpop.f32.mrf.mxu0  ;;  %v3217_v34 = vmov %v1317_v25  ;;  %p2414_p3 = por (%p2999_p8), %p2413_p2, %p2412_p1 }
 0x545   : >> { %v3218_v35 = vmov %v1316_v47  ;;  %v3221_v38 = vmov %v1005_v13  ;;  %v1325_v34 = vmul.f32 (%p2999_p8), %v2370_v31, %v1317_v25  ;;  %v1324_v36 = vmul.f32 (%p2999_p8), %v2372_v33, %v1316_v47  ;;  %v1758_v13 = vld [vmem:[%s3196_s11 + $0x20] sm:$0xff] (%p2999_p8)  ;;  %p2408_p0 = pneg (%p2999_p8), %p2407_p12 }
 0x546   : > { %v1485_v35 = vld [vmem:[%s3190_s5 + $0x10] sm:$0xff]  ;;  %v2019_v47 = vld [vmem:[%s3230_s19] ss:$0 sm:$0xff] }
 0x547   : > { %2137 = vmatmul.mubr.msk.f32.vlgmr.msra.gmra.mxu1 %vm641_vm4, %v1325_v34  ;;  %2130 = vmatpush3.msra.mxu0 %v1485_v35  ;;  %p2415_p5 = pnand %p2414_p3, %p2408_p0 }
 0x548   : > { %2166 = vmatprep.mubr.msk.f32.mxu1 %vm2593_vm1, %v2592_v8  ;;  %2139 = vmatprep.subr.mxu0 %v2592_v8 }
 0x549   : > { %2132 = vmatmul.mubr.msk.f32.vlgmr.msra.gmra.mxu0 %vm641_vm4, %v1324_v36  ;;  %2151 = vmatpush3.msra.mxu1 %v1761_v9 }
 0x54a   : > { %2147 = vmatprep.mubr.msk.f32.mxu0 %vm2593_vm1, %v2592_v8  ;;  %2140 = vmatpush3.msra.mxu0 %v1668_v60 }
 0x54b   : > { %2141 = vmatprep.subr.mxu0 %v2592_v8  ;;  %2152 = vmatprep.subr.mxu1 %v2592_v8 }
 0x54c   : > { %2153 = vmatpush3.msra.mxu1 %v1760_v11 }
 0x54d   : > { %2154 = vmatprep.subr.mxu1 %v2592_v8 }
 0x54e   : > { %2155 = vmatpush3.msra.mxu1 %v1759_v12 }
 0x54f   : > { %2156 = vmatprep.subr.mxu1 %v2592_v8 }
 0x550   : > { %2157 = vmatpush3.msra.mxu1 %v1758_v13 }
 0x551   : > { %2158 = vmatprep.subr.mxu1 %v2592_v8 }
 0x552   : > { %2159 = vmatpush3.msra.mxu1 %v1757_v37 }
 0x553   : > { %2160 = vmatprep.subr.mxu1 %v2592_v8 }
 0x554   : > { %2161 = vmatpush3.msra.mxu1 %v1756_v14 }
 0x555   : > { %2162 = vmatprep.subr.mxu1 %v2592_v8 }
 0x556   : > { %2163 = vmatpush3.msra.mxu1 %v1755_v15 }
 0x557   : > { %2164 = vmatprep.subr.mxu1 %v2592_v8 }
 0x558   : > { %2165 = vmatpush3.msra.mxu1 %v1754_v16 }
 0x590   : > { %v1405_v39 = vpop.f32.mrf.mxu0 }
 0x591   : > { %v1409_v48 = vadd.f32 %v2010_v17, %v1405_v39 }
 0x592   : > { %v2123_v26 = vpop.f32.mrf.mxu0 }
 0x602   : > { %v1480_v44 = vpop.f32.mrf.mxu0 }
 0x603   : > { %v1484_v51 = vadd.f32 %v1480_v44, %v1409_v48 }
 0x604   : > { %v2128_v50 = vpop.f32.mrf.mxu0 }
 0x607   : > { %v1630_v27 = vpop.f32.mrf.mxu1 }
 0x609   : > { %v2138_v49 = vpop.f32.mrf.mxu1  ;;  %v1555_v42 = vpop.f32.mrf.mxu0 }
 0x60a   : > { %v1559_v43 = vadd.f32 %v1555_v42, %v1484_v51 }
 0x60b   : > { %v2133_v52 = vpop.f32.mrf.mxu0 }
 0x60c   : > { %v1634_v53 = vadd.f32 %v1630_v27, %v1559_v43 }
 0x60e   : > { %v3075_v54 = vadd.f32 %v1634_v53, %v2771_v0  ;;  %v1667_v0 = vld [vmem:[%s3194_s9 + $0x10] sm:$0xff] }
 0x60f   : > { %2142 = vmatpush3.msra.mxu0 %v1667_v0 }
 0x610   : > { %v1638_v55 = vsel %vm476_vm0, %v3075_v54, 0.0  ;;  %2143 = vmatprep.subr.mxu0 %v2592_v8 }
 0x611   : > { %1639 = vadd.xlane.f32.xlu0 %v1638_v55  ;;  %2144 = vmatpush3.msra.mxu0 %v1666_v61 }
 0x612   : > { %2145 = vmatprep.subr.mxu0 %v2592_v8 }
 0x613   : > { %2146 = vmatpush3.msra.mxu0 %v1665_v62 }
 0x69a   : > { %v1640_v56 = vpop.xlane.xlu0 %1639 }
 0x69b   : > { %v1641_v57 = vmul.f32 0.03125, %v1640_v56 }
 0x69d   : > { %v1642_v58 = vsub.f32 %v3075_v54, %v1641_v57 }
 0x69f   : > { %v1643_v59 = vmul.f32 %v1642_v58, %v1642_v58 }
 0x6a1   : > { %v1644_v46 = vsel %vm476_vm0, %v1643_v59, 0.0 }
 0x6a2   : > { %1645 = vadd.xlane.f32.xlu0 %v1644_v46 }
 0x72b   : > { %v1646_v63 = vpop.xlane.xlu0 %1645 }
 0x72c   : > { %v1647_v1 = vmul.f32 0.03125, %v1646_v63 }
 0x72e   : > { %v1648_v2 = vadd.f32 1e-05, %v1647_v1 }
 0x730   : > { %2373 = vrsqrt.f32 %v1648_v2 }
 0x73d   : > { %v2374_v3 = vpop.eup %2373 }
 0x73e   : > { %v1650_v5 = vmul.f32 %v2374_v3, %v1642_v58 }
 0x740   : > { %v1657_v7 = vmul.f32 %v2015_v4, %v1650_v5 }
 0x742   : > { %v1664_v41 = vadd.f32 %v2016_v6, %v1657_v7 }
 0x744   : > { %2148 = vmatmul.mubr.msk.f32.vlgmr.msra.gmra.mxu0 %vm476_vm0, %v1664_v41 }
 0x804   : > { %v1745_v19 = vpop.f32.mrf.mxu0 }
 0x805   : > { %v1746_v20 = vadd.f32 %v2017_v18, %v1745_v19 }
 0x806   : > { %v2149_v40 = vpop.f32.mrf.mxu0 }
 0x807   : > { %v1750_v21 = vmul.f32 0.70710677, %v1746_v20  ;;  %v1749_v8 = vmul.f32 0.5, %v1746_v20 }
 0x809   : > { %2375 = verf.f32 %v1750_v21 }
 0x816   : > { %v2376_v25 = vpop.eup %2375 }
 0x817   : > { %v1752_v28 = vadd.f32 1.0, %v2376_v25 }
 0x819   : > { %v1753_v30 = vmul.f32 %v1752_v28, %v1749_v8 }
 0x81b   : > { %2167 = vmatmul.mubr.msk.f32.vlgmr.msra.gmra.mxu1 %vm603_vm2, %v1753_v30 }
 0x8db   : > { %v1838_v38 = vpop.f32.mrf.mxu1 }
 0x8dc   : > { %v1839_v45 = vadd.f32 %v2019_v47, %v1838_v38 }
 0x8dd   : > { %v2168_v10 = vpop.f32.mrf.mxu1 }
 0x8de   : > { %v1842_v22 = vadd.f32 %v1839_v45, %v3075_v54 }
 0x8e0   : > { %1843 = vst.msk [vmem:[%s2825_s16] sm:$0xff] %vm476_vm0, %v1842_v22 }
 0x8e1   : > { %2418 = shalt.err (!%p2415_p5)
}
 0x8e2   : > { %s2419_s19 = scalar_lea.hbm %s1857_s24, 128  ;;  %s2423_s15 = scalar_lea.hbm %s3231_s22, 256 }
 0x8e3   : > { %p2420_p6 = scmp.ne.s32.totalorder %s1857_s24, %s2419_s19  ;;  %p2424_p4 = scmp.lt.s32.totalorder %s1857_s24, %s3231_s22 }
 0x8e4   : > { %p2425_p13 = scmp.lt.s32.totalorder %s2423_s15, %s2419_s19 }
 0x8e5   : > { %p2421_p7 = pnand %p2420_p6, %p2726_p9 }
 0x8e6   : > { %p2426_p8 = por %p2425_p13, %p2424_p4 }
 0x8e7   : > { %p2422_p10 = pneg %p2421_p7 }
 0x8e9   : > { %p2427_p11 = pnand %p2426_p8, %p2422_p10 }
 0x8eb   : > { %2430 = shalt.err (!%p2427_p11)
}
 0x8ec   : > { %2171 = dma.vmem_to_hbm [thread:$0]  (%p2726_p9), %s1860_s17, 128, %s1857_s24, %s1845_s14  }
 0x8ed PF: > { %s3232_s10 = sld [smem:[#allocation9_spill]]  ;;  %p3233_p12 = scmp.ne.s32.totalorder %s3211_s23, 0 }
 0x8ee   : > { %p3234_p0 = scmp.ge.s32.totalorder %s2537_s30, 2 }
 0x8f0   : > { %p2178_p1 = pnand %p3234_p0, %p3233_p12 }
 0x8f2   : > { %p2179_p2 = pneg %p2178_p1 }
 0x8f3   : > { %s1871_s13 = sand.u32 1, %s3232_s10  }
 0x8f4   : > { %s1872_s28 = scalar_lea.sflag [#allocation5], %s1871_s13 }
 0x8f5   : > { %2512 = dma.done.wait (%p2179_p2), %s1872_s28, 128  }
 0x8f6   : > { %2514 = vsyncadd (%p2179_p2), %s1872_s28, 4294967168  ;;  %s29_s30 = sadd.s32 1, %s2537_s30   ;;  %s3235_s20 = sld [smem:[#allocation11_spill]] }
 0x8f7   : > { %p26_p3 = scmp.ge.s32.totalorder %s29_s30, 4   ;;  %s3236_s21 = sld [smem:[#allocation10_spill]] }
 0x8f8   : > { %s3237_s25 = smov %s2521_s26  ;;  %s3238_s26 = smov %s2525_s27 }
 0x8f9   : > { %s3240_s28 = smov %s2533_s29  ;;  %28 = sbr.rel (!%p26_p3) target bundleno = 10 (0xa), region = 137 }
 0x8fc   : > { %s3239_s27 = smov %s3235_s20 }
 0x8fd   : > { %s3241_s29 = smov %s3236_s21 }
 0x8fe   :  { %1877 = vsyncpa [#allocation4], 1 }
 0x8ff   :  { %1879 = vsyncpa [#allocation4 + $0x1], 1 }
 0x900   :  { %1880 = vsyncpa [#allocation5], 1 }
 0x901   :  { %1882 = vsyncpa [#allocation5 + $0x1], 1 }

</bundles_post_ra>
